<compile_context>
chip_gen: v7x
topology: tpu7x:2x2x1
jax: 0.10.0
libtpu: 0.0.40
codegen_flags: <defaults>
</compile_context>

<pallas_src>
import functools

import jax
import jax.numpy as jnp
from jax import lax
from jax.experimental import pallas as pl
from jax.experimental.pallas import tpu as pltpu

MARGIN = 11.3137


def _round_up(x, m):
    return ((x + m - 1) // m) * m


def _vmem_params():
    """(byte budget used to size tile_b, vmem_limit_bytes) per TPU generation."""
    vmem_cap = 64 << 20  # conservative default = v7x-class (64 MiB physical)
    try:
        vmem_cap = int(pltpu.get_tpu_info().vmem_capacity_bytes)
    except Exception:
        pass
    if vmem_cap > (64 << 20):        # v5e / v6e: 128 MiB physical VMEM
        return 80 << 20, 100 << 20
    return 40 << 20, 48 << 20        # v7x: 64 MiB physical VMEM


def _num_tensorcores_per_chip():
    """2 on v7x (2 TCs/chip), 1 on v5e/v6e; defensive default is 1."""
    try:
        kind = (jax.devices()[0].device_kind or "").lower()
        if "v7" in kind:
            return 2
    except Exception:
        pass
    return 1


def _triplet_loss_kernel(a_ref, p_ref, n_ref, o_ref, acc_ref, *,
                         margin, true_b, tile_b, tiles_per_split, need_mask):
    s = pl.program_id(0)   # batch split      ("parallel", only >1 on v7x)
    t = pl.program_id(1)   # tile within split ("arbitrary" reduction axis)

    @pl.when(t == 0)
    def _init():
        acc_ref[...] = jnp.zeros_like(acc_ref)

    a = a_ref[...].astype(jnp.float32)

    # Positive branch fully reduced before touching n_ref -> at most two
    # full-tile f32 temporaries (a, d) are live at once.
    d = a - p_ref[...].astype(jnp.float32)
    dp = jnp.sqrt(jnp.sum(d * d, axis=1, keepdims=True))    # (tile_b, 1)
    d = a - n_ref[...].astype(jnp.float32)
    dn = jnp.sqrt(jnp.sum(d * d, axis=1, keepdims=True))    # (tile_b, 1)

    losses = jnp.maximum(dp - dn + margin, 0.0)              # (tile_b, 1)

    if need_mask:
        # Zero ragged-tail rows (clipped DMA leaves garbage there) and rows of
        # any redundant split step; uses the UNCLAMPED logical tile index.
        # Cost is one (tile_b, 1) column of VPU work -> pure filler under DMA.
        row0 = (s * tiles_per_split + t) * tile_b
        rows = row0 + lax.broadcasted_iota(jnp.int32, (tile_b, 1), 0)
        losses = jnp.where(rows < true_b, losses, 0.0)

    # Scalar running sum: no lane-padded (tile_b, 128) accumulator in VMEM.
    acc_ref[...] += jnp.sum(losses, axis=0, keepdims=True)   # (1, 1)

    @pl.when(t == pl.num_programs(1) - 1)
    def _finalize():
        # Lane-dense output block (unmasked vst), one per split.
        o_ref[...] = jnp.broadcast_to(acc_ref[...].reshape(1, 1, 1), (1, 8, 128))


def triplet_loss(anchor, positive, negative, margin=MARGIN, size_average=True,
                 max_tile_b=None):
    """Pallas TPU implementation of TripletLoss.forward.

    `max_tile_b` is a test hook to force the multi-tile / ragged-tail path;
    leave it None in production so tile_b is sized purely from the VMEM budget.
    """
    B, D = anchor.shape
    in_itemsize = jnp.dtype(anchor.dtype).itemsize
    lane_d = _round_up(D, 128)

    vmem_budget, vmem_cap_limit = _vmem_params()
    n_tc = _num_tensorcores_per_chip()

    # --- batch tile: as big as the budget allows (HBM-streaming op) ----------
    #   3 input streams x 2 pipeline buffers (input dtype)
    # + ~3 full-tile f32 in-body temporaries
    bytes_per_row = 3 * 2 * lane_d * in_itemsize + 3 * lane_d * 4
    tile_b = vmem_budget // bytes_per_row
    if max_tile_b is not None:
        tile_b = min(tile_b, max_tile_b)
    tile_b = max(8, (tile_b // 8) * 8)
    if tile_b >= B:
        tile_b = B               # single full-extent block; no masking needed
    total_tiles = -(-B // tile_b)

    # 2-way "parallel" split only on 2-TC chips and only if there is work to split.
    num_splits = 2 if (n_tc >= 2 and total_tiles >= 2) else 1
    tiles_per_split = -(-total_tiles // num_splits)
    need_mask = (total_tiles * tile_b != B) or \
                (num_splits * tiles_per_split != total_tiles)

    if num_splits * tiles_per_split == total_tiles:
        in_map = lambda s, t: (s * tiles_per_split + t, 0)
    else:
        # Redundant last step of the second split re-reads a real tile (clamped
        # block index); its rows are fully masked out in the kernel.
        in_map = lambda s, t: (jnp.minimum(s * tiles_per_split + t,
                                           total_tiles - 1), 0)

    # Explicit VMEM accounting (inputs + temps + output block + accumulator).
    vmem_need = (3 * 2 * tile_b * lane_d * in_itemsize
                 + 3 * tile_b * lane_d * 4
                 + 2 * 8 * 128 * 4
                 + 8 * 128 * 4)
    vmem_limit = int(min(max(vmem_need + (4 << 20), 32 << 20), vmem_cap_limit))

    kernel = functools.partial(
        _triplet_loss_kernel,
        margin=float(margin), true_b=B, tile_b=tile_b,
        tiles_per_split=tiles_per_split, need_mask=need_mask)

    in_spec = pl.BlockSpec((tile_b, D), in_map)

    partials = pl.pallas_call(
        kernel,
        out_shape=jax.ShapeDtypeStruct((num_splits, 8, 128), jnp.float32),
        grid_spec=pltpu.PrefetchScalarGridSpec(
            num_scalar_prefetch=0,
            grid=(num_splits, tiles_per_split),
            in_specs=[in_spec, in_spec, in_spec],
            out_specs=pl.BlockSpec((1, 8, 128), lambda s, t: (s, 0, 0)),
            scratch_shapes=[pltpu.VMEM((1, 1), jnp.float32)]),
        compiler_params=pltpu.CompilerParams(
            dimension_semantics=("parallel", "arbitrary"),
            vmem_limit_bytes=vmem_limit),
    )(anchor, positive, negative)

    total = jnp.sum(partials[:, 0, 0])
    return total / B if size_average else total


def triplet_loss_ref(anchor, positive, negative, margin=MARGIN, size_average=True):
    """Plain-JAX reference (mirrors the PyTorch forward exactly, no eps)."""
    a = anchor.astype(jnp.float32)
    p = positive.astype(jnp.float32)
    n = negative.astype(jnp.float32)
    dp = jnp.sqrt(jnp.sum((a - p) ** 2, axis=1))
    dn = jnp.sqrt(jnp.sum((a - n) ** 2, axis=1))
    losses = jnp.maximum(dp - dn + margin, 0.0)
    return jnp.mean(losses) if size_average else jnp.sum(losses)


if __name__ == "__main__":
    key = jax.random.PRNGKey(0)
    k_a, k_p, k_n = jax.random.split(key, 3)

    # small synthetic embedding batch (module consumes (B, D) embeddings)
    B, D = 8, 32
    anchor = jax.random.normal(k_a, (B, D), dtype=jnp.float32)
    positive = jax.random.normal(k_p, (B, D), dtype=jnp.float32)
    negative = jax.random.normal(k_n, (B, D), dtype=jnp.float32)

    out = triplet_loss(anchor, positive, negative)
    jax.block_until_ready(out)
    ref = triplet_loss_ref(anchor, positive, negative)
    assert jnp.allclose(out, ref, rtol=1e-5, atol=1e-5), (out, ref)

    # size_average=False path
    out_sum = triplet_loss(anchor, positive, negative, size_average=False)
    jax.block_until_ready(out_sum)
    ref_sum = triplet_loss_ref(anchor, positive, negative, size_average=False)
    assert jnp.allclose(out_sum, ref_sum, rtol=1e-5, atol=1e-5), (out_sum, ref_sum)

    # multi-tile accumulator + ragged-tail mask (no wrapper-side padding)
    B2 = 41
    k_a2, k_p2, k_n2 = jax.random.split(jax.random.PRNGKey(1), 3)
    a2 = jax.random.normal(k_a2, (B2, D), dtype=jnp.float32)
    p2 = jax.random.normal(k_p2, (B2, D), dtype=jnp.float32)
    n2 = jax.random.normal(k_n2, (B2, D), dtype=jnp.float32)
    out2 = triplet_loss(a2, p2, n2, max_tile_b=8)
    jax.block_until_ready(out2)
    ref2 = triplet_loss_ref(a2, p2, n2)
    assert jnp.allclose(out2, ref2, rtol=1e-5, atol=1e-5), (out2, ref2)

    # bf16 pass-through (HBM stream stays narrow; kernel upcasts in-register)
    B3, D3 = 64, 160
    k_a3, k_p3, k_n3 = jax.random.split(jax.random.PRNGKey(2), 3)
    a3 = jax.random.normal(k_a3, (B3, D3), dtype=jnp.float32).astype(jnp.bfloat16)
    p3 = jax.random.normal(k_p3, (B3, D3), dtype=jnp.float32).astype(jnp.bfloat16)
    n3 = jax.random.normal(k_n3, (B3, D3), dtype=jnp.float32).astype(jnp.bfloat16)
    out3 = triplet_loss(a3, p3, n3, max_tile_b=16)
    jax.block_until_ready(out3)
    ref3 = triplet_loss_ref(a3, p3, n3)
    assert jnp.allclose(out3, ref3, rtol=1e-4, atol=1e-4), (out3, ref3)

    print("KERNEL_OK")
</pallas_src>

<mosaic_0001>
module attributes {stable_mosaic.version = 11 : i64} {
  func.func @_triplet_loss_kernel(%arg0: i32, %arg1: i32, %arg2: memref<8x32xf32, #tpu.memory_space<vmem>>, %arg3: memref<8x32xf32, #tpu.memory_space<vmem>>, %arg4: memref<8x32xf32, #tpu.memory_space<vmem>>, %arg5: memref<1x8x128xf32, #tpu.memory_space<vmem>>, %arg6: memref<1x1xf32, #tpu.memory_space<vmem>>) attributes {dimension_semantics = [#tpu.dimension_semantics<parallel>, #tpu.dimension_semantics<arbitrary>], iteration_bounds = array<i64: 1, 1>, scalar_prefetch = 0 : i64, scratch_operands = 1 : i64, tpu.core_type = #tpu.core_type<tc>, window_params = [{transform_indices = @transform_0, window_bounds = array<i64: 8, 32>}, {transform_indices = @transform_1, window_bounds = array<i64: 8, 32>}, {transform_indices = @transform_2, window_bounds = array<i64: 8, 32>}, {transform_indices = @transform_3, window_bounds = array<i64: 1, 8, 128>}]} {
    %c0_i32 = arith.constant 0 : i32
    %0 = arith.cmpi eq, %arg1, %c0_i32 : i32
    %1 = arith.extui %0 : i1 to i32
    %c0_i32_0 = arith.constant 0 : i32
    %2 = arith.cmpi ne, %1, %c0_i32_0 : i32
    scf.if %2 {
      %cst_16 = arith.constant 0.000000e+00 : f32
      %29 = vector.broadcast %cst_16 : f32 to vector<1x1xf32>
      %c0_17 = arith.constant 0 : index
      %c0_18 = arith.constant 0 : index
      %30 = vector.load %arg6[%c0_17, %c0_18] : memref<1x1xf32, #tpu.memory_space<vmem>>, vector<1x1xf32>
      tpu.vector_store %arg6[%c0_17, %c0_18], %29 {strides = array<i32>} : memref<1x1xf32, #tpu.memory_space<vmem>>, vector<1x1xf32>,
    } else {
    }
    %c0 = arith.constant 0 : index
    %c0_1 = arith.constant 0 : index
    %3 = vector.load %arg2[%c0, %c0_1] : memref<8x32xf32, #tpu.memory_space<vmem>>, vector<8x32xf32>
    %c0_2 = arith.constant 0 : index
    %c0_3 = arith.constant 0 : index
    %4 = vector.load %arg3[%c0_2, %c0_3] : memref<8x32xf32, #tpu.memory_space<vmem>>, vector<8x32xf32>
    %5 = arith.subf %3, %4 : vector<8x32xf32>
    %6 = arith.mulf %5, %5 : vector<8x32xf32>
    %cst = arith.constant dense<0.000000e+00> : vector<8xf32>
    %7 = vector.multi_reduction <add>, %6, %cst [1] : vector<8x32xf32> to vector<8xf32>
    %8 = vector.shape_cast %7 : vector<8xf32> to vector<8x1xf32>
    %9 = math.sqrt %8 : vector<8x1xf32>
    %c0_4 = arith.constant 0 : index
    %c0_5 = arith.constant 0 : index
    %10 = vector.load %arg4[%c0_4, %c0_5] : memref<8x32xf32, #tpu.memory_space<vmem>>, vector<8x32xf32>
    %11 = arith.subf %3, %10 : vector<8x32xf32>
    %12 = arith.mulf %11, %11 : vector<8x32xf32>
    %cst_6 = arith.constant dense<0.000000e+00> : vector<8xf32>
    %13 = vector.multi_reduction <add>, %12, %cst_6 [1] : vector<8x32xf32> to vector<8xf32>
    %14 = vector.shape_cast %13 : vector<8xf32> to vector<8x1xf32>
    %15 = math.sqrt %14 : vector<8x1xf32>
    %16 = arith.subf %9, %15 : vector<8x1xf32>
    %cst_7 = arith.constant 1.131370e+01 : f32
    %17 = vector.broadcast %cst_7 : f32 to vector<8x1xf32>
    %18 = arith.addf %16, %17 : vector<8x1xf32>
    %cst_8 = arith.constant 0.000000e+00 : f32
    %19 = vector.broadcast %cst_8 : f32 to vector<8x1xf32>
    %20 = arith.maximumf %18, %19 : vector<8x1xf32>
    %c0_9 = arith.constant 0 : index
    %c0_10 = arith.constant 0 : index
    %21 = vector.load %arg6[%c0_9, %c0_10] : memref<1x1xf32, #tpu.memory_space<vmem>>, vector<1x1xf32>
    %cst_11 = arith.constant dense<0.000000e+00> : vector<1xf32>
    %22 = vector.multi_reduction <add>, %20, %cst_11 [0] : vector<8x1xf32> to vector<1xf32>
    %23 = vector.shape_cast %22 : vector<1xf32> to vector<1x1xf32>
    %24 = arith.addf %21, %23 : vector<1x1xf32>
    %c0_12 = arith.constant 0 : index
    %c0_13 = arith.constant 0 : index
    %25 = vector.load %arg6[%c0_12, %c0_13] : memref<1x1xf32, #tpu.memory_space<vmem>>, vector<1x1xf32>
    tpu.vector_store %arg6[%c0_12, %c0_13], %24 {strides = array<i32>} : memref<1x1xf32, #tpu.memory_space<vmem>>, vector<1x1xf32>,
    %c0_i32_14 = arith.constant 0 : i32
    %26 = arith.cmpi eq, %arg1, %c0_i32_14 : i32
    %27 = arith.extui %26 : i1 to i32
    %c0_i32_15 = arith.constant 0 : i32
    %28 = arith.cmpi ne, %27, %c0_i32_15 : i32
    scf.if %28 {
      %c0_16 = arith.constant 0 : index
      %c0_17 = arith.constant 0 : index
      %29 = vector.load %arg6[%c0_16, %c0_17] : memref<1x1xf32, #tpu.memory_space<vmem>>, vector<1x1xf32>
      %30 = vector.shape_cast %29 : vector<1x1xf32> to vector<1x1x1xf32>
      %31 = vector.shape_cast %30 : vector<1x1x1xf32> to vector<1x1x1xf32>
      %32 = vector.broadcast %31 : vector<1x1x1xf32> to vector<1x8x128xf32>
      %c0_18 = arith.constant 0 : index
      %c0_19 = arith.constant 0 : index
      %c0_20 = arith.constant 0 : index
      %33 = vector.load %arg5[%c0_18, %c0_19, %c0_20] : memref<1x8x128xf32, #tpu.memory_space<vmem>>, vector<1x8x128xf32>
      tpu.vector_store %arg5[%c0_18, %c0_19, %c0_20], %32 {strides = array<i32>} : memref<1x8x128xf32, #tpu.memory_space<vmem>>, vector<1x8x128xf32>,
    } else {
    }
    return
  }
  func.func @transform_0(%arg0: i32, %arg1: i32) -> (i32, i32) {
    %c1_i32 = arith.constant 1 : i32
    %0 = arith.muli %arg0, %c1_i32 : i32
    %1 = arith.addi %0, %arg1 : i32
    %c0_i32 = arith.constant 0 : i32
    %c0_i32_0 = arith.constant 0 : i32
    return %1, %c0_i32 : i32, i32
  }
  func.func @transform_1(%arg0: i32, %arg1: i32) -> (i32, i32) {
    %c1_i32 = arith.constant 1 : i32
    %0 = arith.muli %arg0, %c1_i32 : i32
    %1 = arith.addi %0, %arg1 : i32
    %c0_i32 = arith.constant 0 : i32
    %c0_i32_0 = arith.constant 0 : i32
    return %1, %c0_i32 : i32, i32
  }
  func.func @transform_2(%arg0: i32, %arg1: i32) -> (i32, i32) {
    %c1_i32 = arith.constant 1 : i32
    %0 = arith.muli %arg0, %c1_i32 : i32
    %1 = arith.addi %0, %arg1 : i32
    %c0_i32 = arith.constant 0 : i32
    %c0_i32_0 = arith.constant 0 : i32
    return %1, %c0_i32 : i32, i32
  }
  func.func @transform_3(%arg0: i32, %arg1: i32) -> (i32, i32, i32) {
    %c0_i32 = arith.constant 0 : i32
    %c0_i32_0 = arith.constant 0 : i32
    %c0_i32_1 = arith.constant 0 : i32
    return %arg0, %c0_i32, %c0_i32_0 : i32, i32, i32
  }
}

</mosaic_0001>

<bundles_post_ra>
// kernel: tpu_custom_call.1
= control target key start
LH: loop header
LB: loop body
LE: loop exit
PB: predicated region body
PF: predicated region fallthrough
CT: control target
= control target key end

     0   :  { %8 = vsyncpa [#allocation4], 0  ;;  %s322_s0 = inlined_call_operand.hbm [shape: f32[8,32], index: 0, kind: input, shape index: {}]   ;;  %s323_s1 = inlined_call_operand.hbm [shape: f32[8,32], index: 1, kind: input, shape index: {}]   ;;  %s324_s2 = inlined_call_operand.hbm [shape: f32[8,32], index: 2, kind: input, shape index: {}]   ;;  %s325_s3 = inlined_call_operand.hbm [shape: f32[1,8,128], index: 3, kind: output, shape index: {}]  }
   0x1   :  { %9 = vsyncpa [#allocation7], 0 }
   0x2   :  { %10 = vsyncpa [#allocation5], 0  ;;  %s246_s12 = smov [#allocation6]   ;;  %s247_s14 = smov [#allocation3]  }
   0x3   :  { %s33_s13 = sshll.u32 %s246_s12, 4  ;;  %s20_s15 = sshll.u32 %s247_s14, 4  ;;  %s34_s13 = int_to_ptr.vmem [resolvable:$true] %s33_s13  ;;  %s21_s15 = int_to_ptr.vmem [resolvable:$true] %s20_s15 }
   0x4   :  { %s152_s18 = scalar_lea.hbm %s323_s1, 128 }
   0x5   :  { %p153_p0 = scmp.ne.s32.totalorder %s323_s1, %s152_s18  ;;  %p156_p1 = scmp.lt.u32.totalorder %s152_s18, %s323_s1 }
   0x7   :  { %p158_p2 = pnand %p156_p1, %p153_p0 }
   0x9   :  { %161 = shalt.err (!%p158_p2)
}
   0xa   :  { %s162_s23 = scalar_lea.vmem %s34_s13, 128  ;;  %p167_p4 = scmp.lt.s32.totalorder %s34_s13, %s34_s13 }
   0xb   :  { %p163_p3 = scmp.ne.s32.totalorder %s34_s13, %s162_s23  ;;  %p168_p5 = scmp.lt.s32.totalorder %s162_s23, %s162_s23 }
   0xd   :  { %p169_p6 = por %p168_p5, %p167_p4 }
   0xf   :  { %p170_p7 = pnand %p169_p6, %p163_p3 }
  0x11   :  { %173 = shalt.err (!%p170_p7)
}
  0x12   :  { %36 = dma.hbm_to_vmem [thread:$0]  %s323_s1, 128, %s34_s13, [#allocation7]  }
  0x13   :  { %s174_s28 = scalar_lea.hbm %s322_s0, 128 }
  0x14   :  { %p175_p8 = scmp.ne.s32.totalorder %s322_s0, %s174_s28  ;;  %p178_p9 = scmp.lt.u32.totalorder %s174_s28, %s322_s0 }
  0x16   :  { %p180_p10 = pnand %p178_p9, %p175_p8 }
  0x18   :  { %183 = shalt.err (!%p180_p10)
}
  0x19   :  { %s184_s6 = scalar_lea.vmem %s21_s15, 128  ;;  %p189_p12 = scmp.lt.s32.totalorder %s21_s15, %s21_s15 }
  0x1a   :  { %p185_p11 = scmp.ne.s32.totalorder %s21_s15, %s184_s6  ;;  %p190_p13 = scmp.lt.s32.totalorder %s184_s6, %s184_s6 }
  0x1c   :  { %p191_p0 = por %p190_p13, %p189_p12 }
  0x1e   :  { %p192_p1 = pnand %p191_p0, %p185_p11 }
  0x20   :  { %195 = shalt.err (!%p192_p1)
}
  0x21   :  { %23 = dma.hbm_to_vmem [thread:$0]  %s322_s0, 128, %s21_s15, [#allocation4]  }
  0x22   :  { %s248_s8 = smov [#allocation8]   ;;  %s196_s12 = scalar_lea.hbm %s324_s2, 128 }
  0x23   :  { %s46_s9 = sshll.u32 %s248_s8, 4  ;;  %p197_p2 = scmp.ne.s32.totalorder %s324_s2, %s196_s12  ;;  %s47_s9 = int_to_ptr.vmem [resolvable:$true] %s46_s9 }
  0x24   :  { %p200_p3 = scmp.lt.u32.totalorder %s196_s12, %s324_s2 }
  0x26   :  { %p202_p4 = pnand %p200_p3, %p197_p2 }
  0x28   :  { %205 = shalt.err (!%p202_p4)
}
  0x29   :  { %s206_s18 = scalar_lea.vmem %s47_s9, 128  ;;  %p211_p6 = scmp.lt.s32.totalorder %s47_s9, %s47_s9 }
  0x2a   :  { %p207_p5 = scmp.ne.s32.totalorder %s47_s9, %s206_s18  ;;  %p212_p7 = scmp.lt.s32.totalorder %s206_s18, %s206_s18 }
  0x2c   :  { %p213_p8 = por %p212_p7, %p211_p6 }
  0x2e   :  { %p214_p9 = pnand %p213_p8, %p207_p5 }
  0x30   :  { %217 = shalt.err (!%p214_p9)
}
  0x31   :  { %49 = dma.hbm_to_vmem [thread:$0]  %s324_s2, 128, %s47_s9, [#allocation7]  }
  0x32   :  { %240 = dma.done.wait [#allocation4], 128  }
  0x33   :  { %241 = vsyncadd [#allocation4], 4294967168 }
  0x34   :  { %242 = dma.done.wait [#allocation7], 256  }
  0x35   :  { %243 = vsyncadd [#allocation7], 4294967040  ;;  %vm66_vm0 = vcmask 0   ;;  %v249_v0 = vmov 0.0   ;;  %v68_v1 = vld [vmem:[#allocation3] sm:$0xff]  ;;  %v69_v2 = vld [vmem:[#allocation6] sm:$0xff] }
  0x36   :  { %67 = vst.msk [vmem:[#allocation2] sm:$0x1] %vm66_vm0, %v249_v0  ;;  %v83_v3 = vld [vmem:[#allocation8] sm:$0xff]  ;;  %v70_v4 = vsub.f32 %v68_v1, %v69_v2  ;;  %vm72_vm1 = vcmask 261120   ;;  %v250_v10 = vmov 0   ;;  %s251_s2 = smov [#allocation9]  }
  0x37   :  { %v84_v5 = vsub.f32 %v68_v1, %v83_v3  ;;  %146 = vset.pattern.permute.xlu1 %v250_v10  ;;  %147 = vset.pattern.permute.xlu0 %v250_v10  ;;  %s129_s19 = sshll.u32 %s251_s2, 4  ;;  %s130_s19 = int_to_ptr.vmem [resolvable:$true] %s129_s19 }
  0x38   :  { %v71_v6 = vmul.f32 %v70_v4, %v70_v4  ;;  %s218_s20 = scalar_lea.vmem %s130_s19, 128  ;;  %p223_p11 = scmp.lt.s32.totalorder %s130_s19, %s130_s19 }
  0x39   :  { %v85_v7 = vmul.f32 %v84_v5, %v84_v5  ;;  %p219_p10 = scmp.ne.s32.totalorder %s130_s19, %s218_s20  ;;  %p224_p12 = scmp.lt.s32.totalorder %s218_s20, %s218_s20 }
  0x3a   :  { %v73_v8 = vsel %vm72_vm1, %v71_v6, 0.0 }
  0x3b   :  { %74 = vadd.xlane.f32.xlu0 %v73_v8  ;;  %v86_v9 = vsel %vm72_vm1, %v85_v7, 0.0  ;;  %p225_p13 = por %p224_p12, %p223_p11 }
  0x3d   :  { %v99_v31 = vld [vmem:[#allocation2] sm:$0x1]  ;;  %p226_p0 = pnand %p225_p13, %p219_p10 }
  0x3f   :  { %87 = vadd.xlane.f32.xlu0 %v86_v9 }
  0xc8   :  { %v75_v11 = vpop.xlane.xlu0 %74 }
  0xc9   :  { %148 = vrsqrt.f32 %v75_v11  ;;  %vm78_vm2 = vcmp.eq.f32.partialorder %v75_v11, inf  ;;  %v81_v18 = vand.u32 2147483648, %v75_v11  ;;  %vm80_vm4 = vcmp.eq.f32.partialorder %v75_v11, 0.0 }
  0xcc   :  { %v88_v12 = vpop.xlane.xlu0 %87 }
  0xcd   :  { %150 = vrsqrt.f32 %v88_v12  ;;  %vm91_vm3 = vcmp.eq.f32.partialorder %v88_v12, inf  ;;  %v94_v19 = vand.u32 2147483648, %v88_v12  ;;  %vm93_vm5 = vcmp.eq.f32.partialorder %v88_v12, 0.0 }
  0xd3   :  { %v149_v13 = vpop.eup %148 }
  0xd4   :  { %v77_v14 = vmul.f32 %v149_v13, %v75_v11 }
  0xd6   :  { %v79_v16 = vsel %vm78_vm2, %v75_v11, %v77_v14 }
  0xd7   :  { %v151_v15 = vpop.eup %150  ;;  %v82_v21 = vsel %vm80_vm4, %v81_v18, %v79_v16 }
  0xd8   :  { %v90_v17 = vmul.f32 %v151_v15, %v88_v12 }
  0xda   :  { %v92_v20 = vsel %vm91_vm3, %v88_v12, %v90_v17 }
  0xdb   :  { %v95_v22 = vsel %vm93_vm5, %v94_v19, %v92_v20 }
  0xdc   :  { %v96_v23 = vsub.f32 %v82_v21, %v95_v22 }
  0xde   :  { %v97_v24 = vadd.f32 11.3137, %v96_v23 }
  0xe0   :  { %v98_v25 = vmax.f32 %v97_v24, 0.0 }
  0xe2   :  { %v100_v26 = vrot.slane %v98_v25, 4 }
  0xe4   :  { %v101_v27 = vadd.f32 %v100_v26, %v98_v25 }
  0xe6   :  { %v102_v28 = vrot.slane %v101_v27, 2 }
  0xe8   :  { %v103_v29 = vadd.f32 %v102_v28, %v101_v27 }
  0xea   :  { %v104_v30 = vrot.slane %v103_v29, 1 }
  0xec   :  { %v105_v32 = vadd.f32 %v104_v30, %v103_v29 }
  0xee   :  { %v106_v33 = vadd.f32 %v105_v32, %v99_v31 }
  0xf0   :  { %108 = vst.msk [vmem:[#allocation2] sm:$0x1] %vm66_vm0, %v106_v33 }
  0xf7   :  { %v139_v34 = vld [vmem:[#allocation2] ss:$0 sm:$0xff] }
  0xf8   :  { %119 = vperm.xlu1 %146, %v139_v34  }
 0x177   :  { %v120_v35 = vpop.permute.xlu1 %119 }
 0x178   :  { %122 = vst [vmem:[#allocation9] sm:$0xff] %v120_v35 }
 0x179   :  { %229 = shalt.err (!%p226_p0)
}
 0x17a   :  { %s230_s23 = scalar_lea.hbm %s325_s3, 128 }
 0x17b   :  { %p231_p1 = scmp.ne.s32.totalorder %s325_s3, %s230_s23  ;;  %p234_p2 = scmp.lt.u32.totalorder %s230_s23, %s325_s3 }
 0x17d   :  { %p236_p3 = pnand %p234_p2, %p231_p1 }
 0x17f   :  { %239 = shalt.err (!%p236_p3)
}
 0x180   :  { %132 = dma.vmem_to_hbm [thread:$0]  %s130_s19, 128, %s325_s3, [#allocation5]  }
 0x181   :  { %244 = dma.done.wait [#allocation5], 128  }
 0x182   :  { %245 = vsyncadd [#allocation5], 4294967168 }
 0x183   :  { %136 = vsyncpa [#allocation4], 1 }
 0x184   :  { %137 = vsyncpa [#allocation7], 1 }
 0x185   :  { %138 = vsyncpa [#allocation5], 1 }

</bundles_post_ra>
